<compile_context>
chip_gen: v5e
topology: v5e:2x2
jax: 0.10.0
libtpu: 0.0.40
codegen_flags: <defaults>
</compile_context>

<pallas_src>
import functools
import math

import jax
import jax.numpy as jnp
from jax import lax
from jax.experimental import pallas as pl
from jax.experimental.pallas import tpu as pltpu


def _round_up(x, m):
    return (x + m - 1) // m * m


def _default_tanh_dtype():
    """bf16 tanh on chips with a bf16 EUP/VPU path (v6e/v7x); fp32 otherwise."""
    try:
        kind = jax.devices()[0].device_kind.lower()
    except Exception:
        return jnp.float32
    if "v6" in kind or "v7" in kind:
        return jnp.bfloat16
    return jnp.float32


def _fused_kernel(x_ref, wx_ref, bx_ref, w2_ref, b2_ref, wv_ref, out_ref,
                  *, h_pad, out_w, tanh_dtype, w2_dtype):
    x = x_ref[...]                                     # (tm, obs) fp32
    # One MXU pass over x covers BOTH the first feature Linear and the action
    # head (weights concatenated along the lane axis). x / wx stay fp32 so
    # the action logits keep full input precision.
    xcat = jnp.dot(x, wx_ref[...],
                   preferred_element_type=jnp.float32) + bx_ref[...]
    # Action/value slab: lane 0 carries bv (pre-loaded in bx), lanes 1..1+A
    # carry x @ wa + ba, remaining pad lanes are exactly 0.
    a_slab = xcat[:, h_pad:h_pad + out_w]

    # Feature tanh's: bf16 on v6e/v7x (single EUP slot is the binding unit at
    # large TM; bf16 runs ~2x fp32 rate), fp32 on v5e / exact mode.
    h1 = jnp.tanh(xcat[:, :h_pad].astype(tanh_dtype))
    h2_pre = jnp.dot(h1.astype(w2_dtype), w2_ref[...],
                     preferred_element_type=jnp.float32) + b2_ref[...]
    h2 = jnp.tanh(h2_pre.astype(tanh_dtype)).astype(jnp.float32)

    # Value head off the MXU: only 1 useful output column, so use VPU
    # multiply + cross-lane reduction (otherwise-idle slots), then merge into
    # lane 0 of the output slab.
    v = jnp.sum(h2 * wv_ref[...], axis=-1, keepdims=True)        # (tm, 1)
    lane = lax.broadcasted_iota(jnp.int32, a_slab.shape, 1)
    out_ref[...] = (a_slab + jnp.where(lane == 0, v, 0.0)).astype(out_ref.dtype)


def pack_params(params, *, w2_dtype=jnp.float32):
    """Pad/concat raw Linear weights into lane-aligned fused kernel weights."""
    w1, b1 = params["w1"], params["b1"]
    w2, b2 = params["w2"], params["b2"]
    wv, bv = params["wv"], params["bv"]
    wa, ba = params["wa"], params["ba"]
    obs, hid = w1.shape
    act = wa.shape[1]
    h_pad = _round_up(hid, 128)          # lane-dense hidden width
    slab_w = _round_up(1 + act, 128)     # lane-dense action/value slab in xcat

    # Fused x-weight: [:, :hid] = w1 (features Linear #1),
    #                 [:, h_pad+1 : h_pad+1+act] = wa (action head on raw x).
    wx = jnp.zeros((obs, h_pad + slab_w), jnp.float32)
    wx = wx.at[:, :hid].set(w1)
    wx = wx.at[:, h_pad + 1:h_pad + 1 + act].set(wa)

    # Fused bias: b1 in hidden lanes, bv in slab lane 0, ba in lanes 1..1+A.
    bx = jnp.zeros((1, h_pad + slab_w), jnp.float32)
    bx = bx.at[:, :hid].set(b1)
    bx = bx.at[:, h_pad:h_pad + 1].set(bv)
    bx = bx.at[:, h_pad + 1:h_pad + 1 + act].set(ba)

    w2p = jnp.zeros((h_pad, h_pad), jnp.float32).at[:hid, :hid].set(w2)
    b2p = jnp.zeros((1, h_pad), jnp.float32).at[:, :hid].set(b2)
    # Value head as a padded row vector (VPU/XLU path, not MXU).
    wvp = jnp.zeros((1, h_pad), jnp.float32).at[:, :hid].set(wv[:, 0])

    return dict(wx=wx, bx=bx, w2=w2p.astype(w2_dtype), b2=b2p, wv=wvp)


def feature_shared_forward(x, packed, action_dim, *, block_b=2048,
                           tanh_dtype=None, min_grid=2):
    """Returns (value, action_logits) like FeatureSharedModel.forward."""
    wx, bx = packed["wx"], packed["bx"]
    w2, b2 = packed["w2"], packed["b2"]
    wv = packed["wv"]
    obs = wx.shape[0]
    h_pad = w2.shape[0]
    slab_w = wx.shape[1] - h_pad
    # Narrow fp32 output slab: col 0 = value, cols 1..1+A = action logits.
    out_w = _round_up(1 + action_dim, 8)
    assert out_w <= slab_w

    B = x.shape[0]
    assert x.shape[1] == obs
    if tanh_dtype is None:
        tanh_dtype = _default_tanh_dtype()
    x = x.astype(jnp.float32)

    # Batch tiling: big tiles (amortize the ~0.35us per-grid-step overhead),
    # but (a) at least `min_grid` steps when possible so the batch axis can
    # shard across v7x's 2 TensorCores, and (b) tiles balanced so the padded
    # last tile wastes few rows.
    b8 = _round_up(max(B, 8), 8)
    num_tiles = max(min_grid, pl.cdiv(b8, block_b))
    tm = _round_up(pl.cdiv(b8, num_tiles), 8)
    b_pad = _round_up(B, tm)
    if b_pad != B:
        x = jnp.pad(x, ((0, b_pad - B), (0, 0)))
    grid = (b_pad // tm,)

    kernel = functools.partial(_fused_kernel, h_pad=h_pad, out_w=out_w,
                               tanh_dtype=tanh_dtype, w2_dtype=w2.dtype)
    out = pl.pallas_call(
        kernel,
        out_shape=jax.ShapeDtypeStruct((b_pad, out_w), jnp.float32),
        grid_spec=pltpu.PrefetchScalarGridSpec(
            num_scalar_prefetch=0,
            grid=grid,
            in_specs=[
                # x: tiled along batch (pipelined HBM<->VMEM).
                pl.BlockSpec((tm, obs), lambda i: (i, 0)),
                # Weights/biases: constant block index -> VMEM-resident
                # across all grid iterations (no re-DMA).
                pl.BlockSpec((obs, h_pad + slab_w), lambda i: (0, 0)),
                pl.BlockSpec((1, h_pad + slab_w), lambda i: (0, 0)),
                pl.BlockSpec((h_pad, h_pad), lambda i: (0, 0)),
                pl.BlockSpec((1, h_pad), lambda i: (0, 0)),
                pl.BlockSpec((1, h_pad), lambda i: (0, 0)),
            ],
            out_specs=pl.BlockSpec((tm, out_w), lambda i: (i, 0)),
        ),
        compiler_params=pltpu.CompilerParams(
            # Batch axis is independent -> shard across v7x's 2 TensorCores.
            dimension_semantics=("parallel",),
            # Covers large tiles on v5e (16 MiB scoped default); default
            # elsewhere.
            vmem_limit_bytes=32 * 1024 * 1024,
        ),
    )(x, wx, bx, w2, b2, wv)

    v = out[:B, 0:1]
    a = out[:B, 1:1 + action_dim]
    return v, a


def _init_linear(key, fan_in, fan_out):
    """PyTorch nn.Linear default init: U(-1/sqrt(fan_in), 1/sqrt(fan_in))."""
    kw, kb = jax.random.split(key)
    bound = 1.0 / math.sqrt(fan_in)
    w = jax.random.uniform(kw, (fan_in, fan_out), jnp.float32, -bound, bound)
    b = jax.random.uniform(kb, (1, fan_out), jnp.float32, -bound, bound)
    return w, b


def make_params(key, obs_dim, hidden, action_dim):
    # The PyTorch forward applies action_head (built with in_features=hidden)
    # to the raw observation, so obs_dim must equal hidden for the module to run.
    assert obs_dim == hidden, "FeatureSharedModel quirk requires obs_dim == hidden"
    k1, k2, k3, k4 = jax.random.split(key, 4)
    w1, b1 = _init_linear(k1, obs_dim, hidden)      # LinearWithTraces #1
    w2, b2 = _init_linear(k2, hidden, hidden)       # LinearWithTraces #2
    wv, bv = _init_linear(k3, hidden, 1)            # value head Linear(H, 1)
    wa, ba = _init_linear(k4, obs_dim, action_dim)  # action head (on raw x)
    return dict(w1=w1, b1=b1, w2=w2, b2=b2, wv=wv, bv=bv, wa=wa, ba=ba)


def _reference_forward(x, p):
    h1 = jnp.tanh(x @ p["w1"] + p["b1"])
    h2 = jnp.tanh(h1 @ p["w2"] + p["b2"])
    v = h2 @ p["wv"] + p["bv"]
    a = x @ p["wa"] + p["ba"]
    return v, a


if __name__ == "__main__":
    # Module-consistent shapes; B=500 exercises both the >=2-tile grid guard
    # (tm=256, grid=(2,)) and the pad-to-tile path.
    B, OBS, HID, ACT = 500, 32, 32, 8
    key = jax.random.PRNGKey(0)
    kx, kp = jax.random.split(key)
    x = jax.random.normal(kx, (B, OBS), jnp.float32)
    params = make_params(kp, OBS, HID, ACT)
    v_ref, a_ref = _reference_forward(x, params)

    # Exact path (fp32 tanh, fp32 weights): parity with the PyTorch module.
    packed = pack_params(params, w2_dtype=jnp.float32)
    v, a = feature_shared_forward(x, packed, ACT, tanh_dtype=jnp.float32)
    jax.block_until_ready((v, a))
    assert v.shape == (B, 1) and a.shape == (B, ACT)
    assert jnp.allclose(v, v_ref, atol=1e-5), "value head mismatch (fp32)"
    assert jnp.allclose(a, a_ref, atol=1e-5), "action head mismatch (fp32)"

    # Fast path: chip-appropriate tanh dtype (bf16 on v6e/v7x, fp32 on v5e)
    # and bf16 second-layer weights.  x / action head stay fp32, so action
    # logits remain exact; only the value path picks up bf16 rounding.
    packed_fast = pack_params(params, w2_dtype=jnp.bfloat16)
    v16, a16 = feature_shared_forward(x, packed_fast, ACT)
    jax.block_until_ready((v16, a16))
    assert jnp.allclose(a16, a_ref, atol=1e-5), "action head mismatch (fast)"
    assert jnp.allclose(v16, v_ref, atol=5e-2), "value head mismatch (fast)"

    print("KERNEL_OK")
</pallas_src>

<mosaic_0001>
module attributes {stable_mosaic.version = 11 : i64} {
  func.func @_fused_kernel(%arg0: i32, %arg1: memref<256x32xf32, #tpu.memory_space<vmem>>, %arg2: memref<32x256xf32, #tpu.memory_space<vmem>>, %arg3: memref<1x256xf32, #tpu.memory_space<vmem>>, %arg4: memref<128x128xf32, #tpu.memory_space<vmem>>, %arg5: memref<1x128xf32, #tpu.memory_space<vmem>>, %arg6: memref<1x128xf32, #tpu.memory_space<vmem>>, %arg7: memref<256x16xf32, #tpu.memory_space<vmem>>) attributes {dimension_semantics = [#tpu.dimension_semantics<parallel>], iteration_bounds = array<i64: 2>, scalar_prefetch = 0 : i64, scratch_operands = 0 : i64, tpu.core_type = #tpu.core_type<tc>, window_params = [{transform_indices = @transform_0, window_bounds = array<i64: 256, 32>}, {pipeline_mode = #tpu.pipeline_mode<synchronous>, transform_indices = @transform_1, window_bounds = array<i64: 32, 256>}, {pipeline_mode = #tpu.pipeline_mode<synchronous>, transform_indices = @transform_2, window_bounds = array<i64: 1, 256>}, {pipeline_mode = #tpu.pipeline_mode<synchronous>, transform_indices = @transform_3, window_bounds = array<i64: 128, 128>}, {pipeline_mode = #tpu.pipeline_mode<synchronous>, transform_indices = @transform_4, window_bounds = array<i64: 1, 128>}, {pipeline_mode = #tpu.pipeline_mode<synchronous>, transform_indices = @transform_5, window_bounds = array<i64: 1, 128>}, {transform_indices = @transform_6, window_bounds = array<i64: 256, 16>}]} {
    %c0 = arith.constant 0 : index
    %c0_0 = arith.constant 0 : index
    %0 = vector.load %arg1[%c0, %c0_0] : memref<256x32xf32, #tpu.memory_space<vmem>>, vector<256x32xf32>
    %c0_1 = arith.constant 0 : index
    %c0_2 = arith.constant 0 : index
    %1 = vector.load %arg2[%c0_1, %c0_2] : memref<32x256xf32, #tpu.memory_space<vmem>>, vector<32x256xf32>
    %cst = arith.constant dense<0.000000e+00> : vector<256x256xf32>
    %2 = tpu.matmul %0, %1, %cst {dimension_numbers = #tpu.dot_dimension_numbers<[1], [0], [0], [1], [0, 0, 1, 1], [], []>} : vector<256x32xf32>, vector<32x256xf32>, vector<256x256xf32> -> vector<256x256xf32>
    %c0_3 = arith.constant 0 : index
    %c0_4 = arith.constant 0 : index
    %3 = vector.load %arg3[%c0_3, %c0_4] : memref<1x256xf32, #tpu.memory_space<vmem>>, vector<1x256xf32>
    %4 = vector.broadcast %3 : vector<1x256xf32> to vector<256x256xf32>
    %5 = arith.addf %2, %4 : vector<256x256xf32>
    %6 = vector.extract_strided_slice %5 {offsets = [0, 128], sizes = [256, 16], strides = [1, 1]} : vector<256x256xf32> to vector<256x16xf32>
    %7 = vector.extract_strided_slice %5 {offsets = [0, 0], sizes = [256, 128], strides = [1, 1]} : vector<256x256xf32> to vector<256x128xf32>
    %8 = math.tanh %7 : vector<256x128xf32>
    %c0_5 = arith.constant 0 : index
    %c0_6 = arith.constant 0 : index
    %9 = vector.load %arg4[%c0_5, %c0_6] : memref<128x128xf32, #tpu.memory_space<vmem>>, vector<128x128xf32>
    %cst_7 = arith.constant dense<0.000000e+00> : vector<256x128xf32>
    %10 = tpu.matmul %8, %9, %cst_7 {dimension_numbers = #tpu.dot_dimension_numbers<[1], [0], [0], [1], [0, 0, 1, 1], [], []>} : vector<256x128xf32>, vector<128x128xf32>, vector<256x128xf32> -> vector<256x128xf32>
    %c0_8 = arith.constant 0 : index
    %c0_9 = arith.constant 0 : index
    %11 = vector.load %arg5[%c0_8, %c0_9] : memref<1x128xf32, #tpu.memory_space<vmem>>, vector<1x128xf32>
    %12 = vector.broadcast %11 : vector<1x128xf32> to vector<256x128xf32>
    %13 = arith.addf %10, %12 : vector<256x128xf32>
    %14 = math.tanh %13 : vector<256x128xf32>
    %c0_10 = arith.constant 0 : index
    %c0_11 = arith.constant 0 : index
    %15 = vector.load %arg6[%c0_10, %c0_11] : memref<1x128xf32, #tpu.memory_space<vmem>>, vector<1x128xf32>
    %16 = vector.broadcast %15 : vector<1x128xf32> to vector<256x128xf32>
    %17 = arith.mulf %14, %16 : vector<256x128xf32>
    %cst_12 = arith.constant dense<0.000000e+00> : vector<256xf32>
    %18 = vector.multi_reduction <add>, %17, %cst_12 [1] : vector<256x128xf32> to vector<256xf32>
    %19 = vector.shape_cast %18 : vector<256xf32> to vector<256x1xf32>
    %20 = tpu.iota {dimensions = array<i32: 1>} : vector<256x16xi32>
    %c0_i32 = arith.constant 0 : i32
    %21 = vector.broadcast %c0_i32 : i32 to vector<256x16xi32>
    %22 = arith.cmpi eq, %20, %21 : vector<256x16xi32>
    %cst_13 = arith.constant 0.000000e+00 : f32
    %23 = vector.shape_cast %19 : vector<256x1xf32> to vector<256x1xf32>
    %24 = vector.broadcast %23 : vector<256x1xf32> to vector<256x16xf32>
    %25 = vector.broadcast %cst_13 : f32 to vector<256x16xf32>
    %26 = arith.select %22, %24, %25 : vector<256x16xi1>, vector<256x16xf32>
    %27 = arith.addf %6, %26 : vector<256x16xf32>
    %c0_14 = arith.constant 0 : index
    %c0_15 = arith.constant 0 : index
    %28 = vector.load %arg7[%c0_14, %c0_15] : memref<256x16xf32, #tpu.memory_space<vmem>>, vector<256x16xf32>
    tpu.vector_store %arg7[%c0_14, %c0_15], %27 {strides = array<i32>} : memref<256x16xf32, #tpu.memory_space<vmem>>, vector<256x16xf32>,
    return
  }
  func.func @transform_0(%arg0: i32) -> (i32, i32) {
    %c0_i32 = arith.constant 0 : i32
    %c0_i32_0 = arith.constant 0 : i32
    return %arg0, %c0_i32 : i32, i32
  }
  func.func @transform_1(%arg0: i32) -> (i32, i32) {
    %c0_i32 = arith.constant 0 : i32
    %c0_i32_0 = arith.constant 0 : i32
    %c0_i32_1 = arith.constant 0 : i32
    return %c0_i32, %c0_i32_0 : i32, i32
  }
  func.func @transform_2(%arg0: i32) -> (i32, i32) {
    %c0_i32 = arith.constant 0 : i32
    %c0_i32_0 = arith.constant 0 : i32
    %c0_i32_1 = arith.constant 0 : i32
    return %c0_i32, %c0_i32_0 : i32, i32
  }
  func.func @transform_3(%arg0: i32) -> (i32, i32) {
    %c0_i32 = arith.constant 0 : i32
    %c0_i32_0 = arith.constant 0 : i32
    %c0_i32_1 = arith.constant 0 : i32
    return %c0_i32, %c0_i32_0 : i32, i32
  }
  func.func @transform_4(%arg0: i32) -> (i32, i32) {
    %c0_i32 = arith.constant 0 : i32
    %c0_i32_0 = arith.constant 0 : i32
    %c0_i32_1 = arith.constant 0 : i32
    return %c0_i32, %c0_i32_0 : i32, i32
  }
  func.func @transform_5(%arg0: i32) -> (i32, i32) {
    %c0_i32 = arith.constant 0 : i32
    %c0_i32_0 = arith.constant 0 : i32
    %c0_i32_1 = arith.constant 0 : i32
    return %c0_i32, %c0_i32_0 : i32, i32
  }
  func.func @transform_6(%arg0: i32) -> (i32, i32) {
    %c0_i32 = arith.constant 0 : i32
    %c0_i32_0 = arith.constant 0 : i32
    return %arg0, %c0_i32 : i32, i32
  }
}

</mosaic_0001>

<bundles_post_ra>
// kernel: tpu_custom_call.1
= control target key start
LH: loop header
LB: loop body
LE: loop exit
PB: predicated region body
PF: predicated region fallthrough
CT: control target
= control target key end

     0   :  { %s1357_s21 = smov 0   ;;  %s2046_s0 = inlined_call_operand.vmem [shape: f32[512,32], index: 0, kind: input, shape index: {}]   ;;  %s2047_s1 = inlined_call_operand.vmem [shape: f32[32,256], index: 1, kind: input, shape index: {}]   ;;  %s2048_s2 = inlined_call_operand.vmem [shape: f32[1,256], index: 2, kind: input, shape index: {}]   ;;  %s2049_s3 = inlined_call_operand.vmem [shape: f32[128,128], index: 3, kind: input, shape index: {}]   ;;  %s2050_s4 = inlined_call_operand.vmem [shape: f32[1,128], index: 4, kind: input, shape index: {}]   ;;  %s2051_s5 = inlined_call_operand.vmem [shape: f32[1,128], index: 5, kind: input, shape index: {}]   ;;  %s2052_s6 = inlined_call_operand.vmem [shape: f32[512,16], index: 6, kind: output, shape index: {}]  }
   0x1 LB: > { %s1077_s22 = sadd.s32 4294967295, %s1320_s21   ;;  %p1081_p0 = scmp.ge.s32.totalorder %s1320_s21, 1  ;;  %s1320_s21 = sphi %s1357_s21, %s16_s21  }
   0x2   : > { %p213_p1 = scmp.lt.s32.totalorder %s1320_s21, 3 }
   0x4   : > { %p214_p2 = pnand %p1081_p0, %p213_p1 }
   0x5   : > { %s1082_s27 = sshll.u32 (!%p214_p2), %s1077_s22, 5 }
   0x6   : > { %217 = sbr.rel (%p214_p2) target bundleno = 665 (0x299), region = 44  ;;  %p244_p3 = scmp.lt.s32.totalorder (!%p214_p2), %s1082_s27, 63 }
   0xb   : > { %v293_v0 = vld [vmem:[%s2047_s1 + $0x30] sm:$0xff]  ;;  %v291_v1 = vld [vmem:[%s2047_s1 + $0x20] sm:$0xff]  ;;  %s2054_s27 = smov (!%p244_p3, %s1082_s27), 63  ;;  %vm301_vm0 = vcmask 261120   ;;  %v1438_v14 = vld [vmem:[%s2049_s3 + $0x78] sm:$0xff]  ;;  %vm988_vm2 = vcmask 130048  }
   0xc   : > { %410 = vmatpush.msra.mxu0 %v293_v0  ;;  %1152 = vmatpush.msra.mxu3 %v293_v0  ;;  %v289_v2 = vld [vmem:[%s2047_s1 + $0x10] sm:$0xff]  ;;  %v287_v3 = vld [vmem:[%s2047_s1] sm:$0xff]  ;;  %s1083_s8 = sshll.u32 %s2054_s27, 3  ;;  %v1451_v16 = vld [vmem:[%s2049_s3 + $0x68] sm:$0xff] }
   0xd   : > { %s1385_s11 = scalar_lea.vmem %s2046_s0, %s1083_s8  ;;  %676 = vmatpush.msra.mxu2 %v1438_v14  ;;  %v1446_v15 = vld [vmem:[%s2049_s3 + $0x70] sm:$0xff]  ;;  %v1457_v17 = vld [vmem:[%s2049_s3 + $0x60] sm:$0xff]  ;;  %v1467_v19 = vld [vmem:[%s2049_s3 + $0x58] sm:$0xff]  ;;  %s1830_s19 = scalar_lea.vmem %s2052_s6, %s1083_s8 }
   0xe   : > { %411 = vmatpush.msra.mxu0 %v291_v1  ;;  %1153 = vmatpush.msra.mxu3 %v291_v1  ;;  %v1388_v4 = vld [vmem:[%s1385_s11] sm:$0xff]  ;;  %v1393_v5 = vld [vmem:[%s1385_s11 + $0x8] sm:$0xff]  ;;  %v1398_v6 = vld [vmem:[%s1385_s11 + $0x10] sm:$0xff] }
   0xf   : > { %v1403_v7 = vld [vmem:[%s1385_s11 + $0x18] sm:$0xff]  ;;  %v1408_v8 = vld [vmem:[%s1385_s11 + $0x20] sm:$0xff]  ;;  %v1413_v9 = vld [vmem:[%s1385_s11 + $0x28] sm:$0xff]  ;;  %677 = vmatpush.msra.mxu2 %v1446_v15 }
  0x10   : > { %412 = vmatpush.msra.mxu0 %v289_v2  ;;  %1154 = vmatpush.msra.mxu3 %v289_v2  ;;  %v1418_v10 = vld [vmem:[%s1385_s11 + $0x30] sm:$0xff]  ;;  %v1423_v11 = vld [vmem:[%s1385_s11 + $0x38] sm:$0xff]  ;;  %v1428_v12 = vld [vmem:[%s1385_s11 + $0x40] sm:$0xff] }
  0x11   : > { %v1433_v13 = vld [vmem:[%s1385_s11 + $0x48] sm:$0xff]  ;;  %678 = vmatpush.msra.mxu2 %v1451_v16  ;;  %v1461_v18 = vld [vmem:[%s1385_s11 + $0x50] sm:$0xff]  ;;  %v1486_v22 = vld [vmem:[%s2049_s3 + $0x40] sm:$0xff] }
  0x12   : > { %413 = vmatpush.msra.mxu0 %v287_v3  ;;  %1155 = vmatpush.msra.mxu3 %v287_v3  ;;  %v1475_v20 = vld [vmem:[%s2049_s3 + $0x50] sm:$0xff]  ;;  %v1480_v21 = vld [vmem:[%s2049_s3 + $0x48] sm:$0xff]  ;;  %v1490_v23 = vld [vmem:[%s1385_s11 + $0x58] sm:$0xff] }
  0x13   : > { %1086 = vmatmul.msk.f32.vlgmr.msra.gmra.mxu0 %vm301_vm0, %v1388_v4  ;;  %679 = vmatpush.msra.mxu2 %v1457_v17  ;;  %v1496_v24 = vld [vmem:[%s2049_s3 + $0x38] sm:$0xff]  ;;  %v1504_v25 = vld [vmem:[%s2049_s3 + $0x30] sm:$0xff]  ;;  %v1509_v26 = vld [vmem:[%s2049_s3 + $0x28] sm:$0xff] }
  0x14   : > { %v1514_v27 = vld [vmem:[%s1385_s11 + $0x60] sm:$0xff]  ;;  %v1525_v29 = vld [vmem:[%s2049_s3 + $0x18] sm:$0xff]  ;;  %v1533_v30 = vld [vmem:[%s2049_s3 + $0x10] sm:$0xff] }
  0x15   : > { %680 = vmatpush.msra.mxu2 %v1467_v19  ;;  %v1519_v28 = vld [vmem:[%s2049_s3 + $0x20] sm:$0xff]  ;;  %v1538_v31 = vld [vmem:[%s2049_s3 + $0x8] sm:$0xff]  ;;  %v1554_v34 = vld [vmem:[%s1385_s11 + $0x70] sm:$0xff] }
  0x16   : > { %v1543_v32 = vld [vmem:[%s1385_s11 + $0x68] sm:$0xff]  ;;  %v1548_v33 = vld [vmem:[%s2049_s3] sm:$0xff]  ;;  %v1559_v35 = vld [vmem:[%s1385_s11 + $0x78] sm:$0xff] }
  0x17   : > { %681 = vmatpush.msra.mxu2 %v1475_v20  ;;  %v1564_v36 = vld [vmem:[%s2048_s2] sm:$0x3]  ;;  %v1578_v42 = vld [vmem:[%s1385_s11 + $0x88] sm:$0xff]  ;;  %v1584_v46 = vld [vmem:[%s1385_s11 + $0x90] sm:$0xff] }
  0x18   : > { %v1569_v37 = vperm.slane %v1564_v36, 0  ;;  %v1572_v39 = vld [vmem:[%s1385_s11 + $0x80] sm:$0xff]  ;;  %v1590_v50 = vld [vmem:[%s1385_s11 + $0x98] sm:$0xff]  ;;  %v1602_v57 = vld [vmem:[%s1385_s11 + $0xc8] sm:$0xff] }
  0x19   : > { %682 = vmatpush.msra.mxu2 %v1480_v21  ;;  %v1596_v54 = vld [vmem:[%s1385_s11 + $0xa0] sm:$0xff]  ;;  %1111 = vmatmul.msk.f32.vlgmr.msra.gmra.mxu3 %vm301_vm0, %v1602_v57  ;;  %v1607_v59 = vld [vmem:[%s1385_s11 + $0xa8] sm:$0xff]  ;;  %v294_v62 = vld [vmem:[%s2047_s1 + $0x38] sm:$0xff] }
  0x1a   : > { %v1616_v63 = vld [vmem:[%s1385_s11 + $0xd0] sm:$0xff]  ;;  %1156 = vmatpush.msrb.mxu3 %v294_v62  ;;  %523 = vmatpush.msra.mxu1 %v294_v62 }
  0x1b   : > { %1087 = vmatmul.msk.f32.gmra.mxu0 %vm301_vm0, %v1393_v5  ;;  %683 = vmatpush.msra.mxu2 %v1486_v22  ;;  %v1621_v1 = vld [vmem:[%s1385_s11 + $0xb0] sm:$0xff] }
  0x1d   : > { %684 = vmatpush.msra.mxu2 %v1496_v24 }
  0x1f   : > { %685 = vmatpush.msra.mxu2 %v1504_v25 }
  0x21   : > { %686 = vmatpush.msra.mxu2 %v1509_v26  ;;  %1112 = vmatmul.msk.f32.gmra.mxu3 %vm301_vm0, %v1616_v63 }
  0x23   : > { %1088 = vmatmul.msk.f32.gmra.mxu0 %vm301_vm0, %v1398_v6  ;;  %687 = vmatpush.msra.mxu2 %v1519_v28 }
  0x25   : > { %688 = vmatpush.msra.mxu2 %v1525_v29 }
  0x27   : > { %689 = vmatpush.msra.mxu2 %v1533_v30 }
  0x29   : > { %690 = vmatpush.msra.mxu2 %v1538_v31 }
  0x2b   : > { %1089 = vmatmul.msk.f32.gmra.mxu0 %vm301_vm0, %v1403_v7  ;;  %691 = vmatpush.msra.mxu2 %v1548_v33 }
  0x33   : > { %1090 = vmatmul.msk.f32.gmra.mxu0 %vm301_vm0, %v1408_v8 }
  0x3b   : > { %1091 = vmatmul.msk.f32.gmra.mxu0 %vm301_vm0, %v1413_v9 }
  0x43   : > { %1092 = vmatmul.msk.f32.gmra.mxu0 %vm301_vm0, %v1418_v10 }
  0x4b   : > { %1093 = vmatmul.msk.f32.gmra.mxu0 %vm301_vm0, %v1423_v11 }
  0x53   : > { %1094 = vmatmul.msk.f32.gmra.mxu0 %vm301_vm0, %v1428_v12 }
  0x5b   : > { %1095 = vmatmul.msk.f32.gmra.mxu0 %vm301_vm0, %v1433_v13 }
  0x63   : > { %1096 = vmatmul.msk.f32.gmra.mxu0 %vm301_vm0, %v1461_v18 }
  0x6b   : > { %1097 = vmatmul.msk.f32.gmra.mxu0 %vm301_vm0, %v1490_v23 }
  0x73   : > { %1098 = vmatmul.msk.f32.gmra.mxu0 %vm301_vm0, %v1514_v27 }
  0x7b   : > { %1099 = vmatmul.msk.f32.gmra.mxu0 %vm301_vm0, %v1543_v32 }
  0x83   : > { %1100 = vmatmul.msk.f32.gmra.mxu0 %vm301_vm0, %v1554_v34 }
  0x8b   : > { %1101 = vmatmul.msk.f32.gmra.mxu0 %vm301_vm0, %v1559_v35 }
  0x90   : > { %v415_v38 = vpop.f32.mrf.mxu0 }
  0x91   : > { %v416_v40 = vadd.f32 %v415_v38, %v1569_v37  ;;  %v1627_v38 = vld [vmem:[%s1385_s11 + $0xd8] sm:$0xff] }
  0x92   : > { %1113 = vmatmul.msk.f32.gmra.mxu3 %vm301_vm0, %v1627_v38 }
  0x93   : > { %1186 = vtanh.f32 %v416_v40  ;;  %1102 = vmatmul.msk.f32.gmra.mxu0 %vm301_vm0, %v1572_v39 }
  0x98   : > { %v418_v41 = vpop.f32.mrf.mxu0 }
  0x99   : > { %v1187_v43 = vpop.eup %1186  ;;  %v419_v44 = vadd.f32 %v418_v41, %v1569_v37  ;;  %v1632_v41 = vld [vmem:[%s1385_s11 + $0xb8] sm:$0xff] }
  0x9a   : > { %692 = vmatmul.f32.vlgmr.msra.gmra.mxu2 %v1187_v43 }
  0x9b   : > { %1188 = vtanh.f32 %v419_v44  ;;  %1103 = vmatmul.msk.f32.gmra.mxu0 %vm301_vm0, %v1578_v42 }
  0xa0   : > { %v421_v45 = vpop.f32.mrf.mxu0 }
  0xa1   : > { %v1189_v47 = vpop.eup %1188  ;;  %v422_v48 = vadd.f32 %v421_v45, %v1569_v37  ;;  %v292_v45 = vld [vmem:[%s2047_s1 + $0x28] sm:$0xff] }
  0xa2   : > { %695 = vmatmul.f32.gmra.mxu2 %v1189_v47  ;;  %v1641_v47 = vld [vmem:[%s1385_s11 + $0xe0] sm:$0xff]  ;;  %1157 = vmatpush.msrb.mxu3 %v292_v45 }
  0xa3   : > { %1190 = vtanh.f32 %v422_v48  ;;  %1104 = vmatmul.msk.f32.gmra.mxu0 %vm301_vm0, %v1584_v46  ;;  %524 = vmatpush.msra.mxu1 %v292_v45 }
  0xa4   : > { %1114 = vmatmul.msk.f32.gmra.mxu3 %vm301_vm0, %v1641_v47 }
  0xa8   : > { %v424_v49 = vpop.f32.mrf.mxu0 }
  0xa9   : > { %v1191_v51 = vpop.eup %1190  ;;  %v425_v52 = vadd.f32 %v424_v49, %v1569_v37  ;;  %v1646_v49 = vld [vmem:[%s1385_s11 + $0xc0] sm:$0xff] }
  0xaa   : > { %698 = vmatmul.f32.gmra.mxu2 %v1191_v51 }
  0xab   : > { %1192 = vtanh.f32 %v425_v52  ;;  %1105 = vmatmul.msk.f32.gmra.mxu0 %vm301_vm0, %v1590_v50 }
  0xb0   : > { %v427_v53 = vpop.f32.mrf.mxu0 }
  0xb1   : > { %v1193_v55 = vpop.eup %1192  ;;  %v428_v56 = vadd.f32 %v427_v53, %v1569_v37  ;;  %v1652_v53 = vld [vmem:[%s1385_s11 + $0xe8] sm:$0xff] }
  0xb2   : > { %701 = vmatmul.f32.gmra.mxu2 %v1193_v55  ;;  %v290_v55 = vld [vmem:[%s2047_s1 + $0x18] sm:$0xff]  ;;  %1115 = vmatmul.msk.f32.gmra.mxu3 %vm301_vm0, %v1652_v53 }
  0xb3   : > { %1194 = vtanh.f32 %v428_v56  ;;  %1106 = vmatmul.msk.f32.gmra.mxu0 %vm301_vm0, %v1596_v54  ;;  %1158 = vmatpush.msrb.mxu3 %v290_v55 }
  0xb4   : > { %525 = vmatpush.msra.mxu1 %v290_v55 }
  0xb8   : > { %v430_v58 = vpop.f32.mrf.mxu0 }
  0xb9   : > { %v1195_v60 = vpop.eup %1194  ;;  %v431_v61 = vadd.f32 %v430_v58, %v1569_v37 }
  0xba   : > { %704 = vmatmul.f32.gmra.mxu2 %v1195_v60 }
  0xbb   : > { %1196 = vtanh.f32 %v431_v61  ;;  %1107 = vmatmul.msk.f32.gmra.mxu0 %vm301_vm0, %v1607_v59  ;;  %v1661_v61 = vld [vmem:[%s1385_s11 + $0xf0] sm:$0xff] }
  0xbc   : > { %1116 = vmatmul.msk.f32.gmra.mxu3 %vm301_vm0, %v1661_v61 }
  0xc0   : > { %v433_v0 = vpop.f32.mrf.mxu0 }
  0xc1   : > { %v1197_v2 = vpop.eup %1196  ;;  %v434_v3 = vadd.f32 %v433_v0, %v1569_v37 }
  0xc2   : > { %707 = vmatmul.f32.gmra.mxu2 %v1197_v2 }
  0xc3   : > { %1198 = vtanh.f32 %v434_v3  ;;  %1108 = vmatmul.msk.f32.gmra.mxu0 %vm301_vm0, %v1621_v1  ;;  %v288_v3 = vld [vmem:[%s2047_s1 + $0x8] sm:$0xff] }
  0xc4   : > { %1159 = vmatpush.msrb.mxu3 %v288_v3  ;;  %526 = vmatpush.msra.mxu1 %v288_v3 }
  0xc5   : > { %1118 = vmatmul.msk.f32.vlgmr.msra.gmra.mxu1 %vm301_vm0, %v1388_v4 }
  0xc6   : > { %1160 = vmatpush.msra.mxu3 %v1438_v14 }
  0xc8   : > { %v436_v40 = vpop.f32.mrf.mxu0  ;;  %1161 = vmatpush.msra.mxu3 %v1446_v15 }
  0xc9   : > { %v1199_v43 = vpop.eup %1198  ;;  %v437_v44 = vadd.f32 %v436_v40, %v1569_v37  ;;  %v1670_v40 = vld [vmem:[%s1385_s11 + $0xf8] sm:$0xff] }
  0xca   : > { %710 = vmatmul.f32.gmra.mxu2 %v1199_v43  ;;  %1117 = vmatmul.msk.f32.gmra.mxu3 %vm301_vm0, %v1670_v40 }
  0xcb   : > { %1200 = vtanh.f32 %v437_v44  ;;  %1109 = vmatmul.msk.f32.gmra.mxu0 %vm301_vm0, %v1632_v41  ;;  %1162 = vmatpush.msra.mxu3 %v1451_v16 }
  0xcd   : > { %1163 = vmatpush.msra.mxu3 %v1457_v17  ;;  %1119 = vmatmul.msk.f32.gmra.mxu1 %vm301_vm0, %v1393_v5 }
  0xcf   : > { %1164 = vmatpush.msra.mxu3 %v1467_v19 }
  0xd0   : > { %v439_v48 = vpop.f32.mrf.mxu0 }
  0xd1   : > { %v1201_v51 = vpop.eup %1200  ;;  %v440_v52 = vadd.f32 %v439_v48, %v1569_v37  ;;  %1165 = vmatpush.msra.mxu3 %v1475_v20 }
  0xd2   : > { %713 = vmatmul.f32.gmra.mxu2 %v1201_v51  ;;  %1143 = vmatmul.msk.f32.vlgmr.msrb.gmra.mxu3 %vm301_vm0, %v1602_v57 }
  0xd3   : > { %1202 = vtanh.f32 %v440_v52  ;;  %1110 = vmatmul.msk.f32.gmra.mxu0 %vm301_vm0, %v1646_v49  ;;  %1166 = vmatpush.msra.mxu3 %v1480_v21 }
  0xd5   : > { %1167 = vmatpush.msra.mxu3 %v1486_v22  ;;  %1120 = vmatmul.msk.f32.gmra.mxu1 %vm301_vm0, %v1398_v6 }
  0xd7   : > { %1168 = vmatpush.msra.mxu3 %v1496_v24 }
  0xd8   : > { %v442_v56 = vpop.f32.mrf.mxu0 }
  0xd9   : > { %v1203_v58 = vpop.eup %1202  ;;  %v443_v60 = vadd.f32 %v442_v56, %v1569_v37  ;;  %1169 = vmatpush.msra.mxu3 %v1504_v25 }
  0xda   : > { %716 = vmatmul.f32.gmra.mxu2 %v1203_v58  ;;  %1144 = vmatmul.msk.f32.gmra.mxu3 %vm301_vm0, %v1616_v63  ;;  %v1737_v63 = vld [vmem:[%s2051_s5] ss:$0 sm:$0xff] }
  0xdb   : > { %1204 = vtanh.f32 %v443_v60  ;;  %1170 = vmatpush.msra.mxu3 %v1509_v26 }
  0xdd   : > { %1171 = vmatpush.msra.mxu3 %v1519_v28  ;;  %1121 = vmatmul.msk.f32.gmra.mxu1 %vm301_vm0, %v1403_v7 }
  0xdf   : > { %1172 = vmatpush.msra.mxu3 %v1525_v29 }
  0xe0   : > { %v445_v62 = vpop.f32.mrf.mxu0 }
  0xe1   : > { %v1205_v0 = vpop.eup %1204  ;;  %v446_v2 = vadd.f32 %v445_v62, %v1569_v37  ;;  %1173 = vmatpush.msra.mxu3 %v1533_v30 }
  0xe2   : > { %719 = vmatmul.f32.gmra.mxu2 %v1205_v0  ;;  %1145 = vmatmul.msk.f32.gmra.mxu3 %vm301_vm0, %v1627_v38 }
  0xe3   : > { %1206 = vtanh.f32 %v446_v2  ;;  %1174 = vmatpush.msra.mxu3 %v1538_v31 }
  0xe5   : > { %1175 = vmatpush.msra.mxu3 %v1548_v33  ;;  %1122 = vmatmul.msk.f32.gmra.mxu1 %vm301_vm0, %v1408_v8 }
  0xe8   : > { %v448_v43 = vpop.f32.mrf.mxu0 }
  0xe9   : > { %v1207_v44 = vpop.eup %1206  ;;  %v449_v45 = vadd.f32 %v448_v43, %v1569_v37 }
  0xea   : > { %722 = vmatmul.f32.gmra.mxu2 %v1207_v44  ;;  %1146 = vmatmul.msk.f32.gmra.mxu3 %vm301_vm0, %v1641_v47 }
  0xeb   : > { %1208 = vtanh.f32 %v449_v45 }
  0xed   : > { %1123 = vmatmul.msk.f32.gmra.mxu1 %vm301_vm0, %v1413_v9  ;;  %v1726_v9 = vld [vmem:[%s2050_s4] ss:$0 sm:$0xff] }
  0xf0   : > { %v451_v4 = vpop.f32.mrf.mxu0 }
  0xf1   : > { %v1209_v14 = vpop.eup %1208  ;;  %v452_v15 = vadd.f32 %v451_v4, %v1569_v37 }
  0xf2   : > { %725 = vmatmul.f32.gmra.mxu2 %v1209_v14  ;;  %1147 = vmatmul.msk.f32.gmra.mxu3 %vm301_vm0, %v1652_v53 }
  0xf3   : > { %1210 = vtanh.f32 %v452_v15 }
  0xf5   : > { %1124 = vmatmul.msk.f32.gmra.mxu1 %vm301_vm0, %v1418_v10 }
  0xf8   : > { %v454_v5 = vpop.f32.mrf.mxu0 }
  0xf9   : > { %v1211_v16 = vpop.eup %1210  ;;  %v455_v17 = vadd.f32 %v454_v5, %v1569_v37 }
  0xfa   : > { %728 = vmatmul.f32.gmra.mxu2 %v1211_v16  ;;  %1148 = vmatmul.msk.f32.gmra.mxu3 %vm301_vm0, %v1661_v61 }
  0xfb   : > { %1212 = vtanh.f32 %v455_v17  ;;  %v490_v17 = vpop.f32.mrf.mxu3 }
  0xfd   : > { %1125 = vmatmul.msk.f32.gmra.mxu1 %vm301_vm0, %v1423_v11 }
 0x100   : > { %v457_v6 = vpop.f32.mrf.mxu0 }
 0x101   : > { %v1213_v19 = vpop.eup %1212  ;;  %v458_v20 = vadd.f32 %v457_v6, %v1569_v37 }
 0x102   : > { %731 = vmatmul.f32.gmra.mxu2 %v1213_v19  ;;  %1149 = vmatmul.msk.f32.gmra.mxu3 %vm301_vm0, %v1670_v40 }
 0x103   : > { %1214 = vtanh.f32 %v458_v20 }
 0x105   : > { %1126 = vmatmul.msk.f32.gmra.mxu1 %vm301_vm0, %v1428_v12 }
 0x108   : > { %v460_v7 = vpop.f32.mrf.mxu0 }
 0x109   : > { %v1215_v21 = vpop.eup %1214  ;;  %v461_v22 = vadd.f32 %v460_v7, %v1569_v37 }
 0x10a   : > { %734 = vmatmul.f32.gmra.mxu2 %v1215_v21 }
 0x10b   : > { %1216 = vtanh.f32 %v461_v22 }
 0x10d   : > { %1127 = vmatmul.msk.f32.gmra.mxu1 %vm301_vm0, %v1433_v13 }
 0x110   : > { %v463_v24 = vpop.f32.mrf.mxu0 }
 0x111   : > { %v1217_v25 = vpop.eup %1216  ;;  %v464_v26 = vadd.f32 %v463_v24, %v1569_v37 }
 0x112   : > { %737 = vmatmul.f32.gmra.mxu2 %v1217_v25  ;;  %v493_v25 = vpop.f32.mrf.mxu3 }
 0x113   : > { %1218 = vtanh.f32 %v464_v26 }
 0x115   : > { %1128 = vmatmul.msk.f32.gmra.mxu1 %vm301_vm0, %v1461_v18 }
 0x118   : > { %v466_v8 = vpop.f32.mrf.mxu0 }
 0x119   : > { %v1219_v28 = vpop.eup %1218  ;;  %v467_v29 = vadd.f32 %v466_v8, %v1569_v37 }
 0x11a   : > { %740 = vmatmul.f32.gmra.mxu2 %v1219_v28 }
 0x11b   : > { %1220 = vtanh.f32 %v467_v29 }
 0x11d   : > { %v693_v30 = vpop.f32.mrf.mxu2  ;;  %1129 = vmatmul.msk.f32.gmra.mxu1 %vm301_vm0, %v1490_v23 }
 0x11e   : > { %v694_v10 = vadd.f32 %v1726_v9, %v693_v30 }
 0x120   : > { %1222 = vtanh.f32 %v694_v10  ;;  %v469_v31 = vpop.f32.mrf.mxu0 }
 0x121   : > { %v1221_v33 = vpop.eup %1220  ;;  %v470_v57 = vadd.f32 %v469_v31, %v1569_v37  ;;  %v491_v31 = vadd.f32 %v490_v17, %v1569_v37 }
 0x122   : > { %743 = vmatmul.f32.gmra.mxu2 %v1221_v33 }
 0x123   : > { %1224 = vtanh.f32 %v470_v57 }
 0x125   : > { %v696_v38 = vpop.f32.mrf.mxu2  ;;  %1130 = vmatmul.msk.f32.gmra.mxu1 %vm301_vm0, %v1514_v27 }
 0x126   : > { %v1223_v47 = vpop.eup %1222  ;;  %v697_v11 = vadd.f32 %v1726_v9, %v696_v38  ;;  %v496_v38 = vpop.f32.mrf.mxu3 }
 0x127   : > { %v825_v48 = vmul.f32 %v1223_v47, %v1737_v63 }
 0x128   : > { %1226 = vtanh.f32 %v697_v11  ;;  %v472_v51 = vpop.f32.mrf.mxu0 }
 0x129   : > { %v1225_v52 = vpop.eup %1224  ;;  %v473_v53 = vadd.f32 %v472_v51, %v1569_v37  ;;  %857 = vadd.xlane.f32.xlu0 %v825_v48  ;;  %v494_v48 = vadd.f32 %v493_v25, %v1569_v37 }
 0x12a   : > { %746 = vmatmul.f32.gmra.mxu2 %v1225_v52 }
 0x12b   : > { %1228 = vtanh.f32 %v473_v53 }
 0x12d   : > { %v699_v55 = vpop.f32.mrf.mxu2  ;;  %1131 = vmatmul.msk.f32.gmra.mxu1 %vm301_vm0, %v1543_v32 }
 0x12e   : > { %v1227_v56 = vpop.eup %1226  ;;  %v700_v12 = vadd.f32 %v1726_v9, %v699_v55  ;;  %v499_v55 = vpop.f32.mrf.mxu3 }
 0x12f   : > { %v826_v58 = vmul.f32 %v1227_v56, %v1737_v63 }
 0x130   : > { %1230 = vtanh.f32 %v700_v12  ;;  %v475_v60 = vpop.f32.mrf.mxu0  ;;  %v497_v12 = vadd.f32 %v496_v38, %v1569_v37 }
 0x131   : > { %v1229_v61 = vpop.eup %1228  ;;  %v476_v62 = vadd.f32 %v475_v60, %v1569_v37  ;;  %859 = vadd.xlane.f32.xlu0 %v826_v58 }
 0x132   : > { %749 = vmatmul.f32.gmra.mxu2 %v1229_v61 }
 0x133   : > { %1232 = vtanh.f32 %v476_v62 }
 0x135   : > { %v702_v0 = vpop.f32.mrf.mxu2  ;;  %1132 = vmatmul.msk.f32.gmra.mxu1 %vm301_vm0, %v1554_v34 }
 0x136   : > { %v1231_v2 = vpop.eup %1230  ;;  %v703_v13 = vadd.f32 %v1726_v9, %v702_v0  ;;  %v502_v62 = vpop.f32.mrf.mxu3 }
 0x137   : > { %v827_v3 = vmul.f32 %v1231_v2, %v1737_v63  ;;  %v500_v2 = vadd.f32 %v499_v55, %v1569_v37 }
 0x138   : > { %1234 = vtanh.f32 %v703_v13  ;;  %v478_v40 = vpop.f32.mrf.mxu0 }
 0x139   : > { %v1233_v43 = vpop.eup %1232  ;;  %v479_v44 = vadd.f32 %v478_v40, %v1569_v37  ;;  %861 = vadd.xlane.f32.xlu1 %v827_v3 }
 0x13a   : > { %752 = vmatmul.f32.gmra.mxu2 %v1233_v43 }
 0x13b   : > { %1236 = vtanh.f32 %v479_v44  ;;  %v503_v44 = vadd.f32 %v502_v62, %v1569_v37 }
 0x13d   : > { %v705_v45 = vpop.f32.mrf.mxu2  ;;  %1133 = vmatmul.msk.f32.gmra.mxu1 %vm301_vm0, %v1559_v35 }
 0x13e   : > { %v1235_v4 = vpop.eup %1234  ;;  %v706_v18 = vadd.f32 %v1726_v9, %v705_v45 }
 0x13f   : > { %v828_v14 = vmul.f32 %v1235_v4, %v1737_v63  ;;  %v505_v45 = vpop.f32.mrf.mxu3 }
 0x140   : > { %1238 = vtanh.f32 %v706_v18  ;;  %v481_v15 = vpop.f32.mrf.mxu0 }
 0x141   : > { %v1237_v5 = vpop.eup %1236  ;;  %v482_v16 = vadd.f32 %v481_v15, %v1569_v37  ;;  %863 = vadd.xlane.f32.xlu1 %v828_v14 }
 0x142   : > { %755 = vmatmul.f32.gmra.mxu2 %v1237_v5  ;;  %v528_v15 = vpop.f32.mrf.mxu1 }
 0x143   : > { %1240 = vtanh.f32 %v482_v16  ;;  %v506_v16 = vadd.f32 %v505_v45, %v1569_v37 }
 0x145   : > { %v708_v6 = vpop.f32.mrf.mxu2  ;;  %1134 = vmatmul.msk.f32.gmra.mxu1 %vm301_vm0, %v1572_v39 }
 0x146   : > { %v1239_v19 = vpop.eup %1238  ;;  %v709_v23 = vadd.f32 %v1726_v9, %v708_v6 }
 0x147   : > { %v829_v20 = vmul.f32 %v1239_v19, %v1737_v63 }
 0x148   : > { %1242 = vtanh.f32 %v709_v23  ;;  %v484_v7 = vpop.f32.mrf.mxu0 }
 0x149   : > { %v1241_v21 = vpop.eup %1240  ;;  %v485_v22 = vadd.f32 %v484_v7, %v1569_v37  ;;  %865 = vadd.xlane.f32.xlu2 %v829_v20 }
 0x14a   : > { %758 = vmatmul.f32.vlgmr.msra.gmra.mxu3 %v1241_v21  ;;  %v531_v20 = vpop.f32.mrf.mxu1 }
 0x14b   : > { %1244 = vtanh.f32 %v485_v22 }
 0x14d   : > { %v711_v24 = vpop.f32.mrf.mxu2  ;;  %1135 = vmatmul.msk.f32.gmra.mxu1 %vm301_vm0, %v1578_v42  ;;  %v508_v23 = vpop.f32.mrf.mxu3 }
 0x14e   : > { %v1243_v26 = vpop.eup %1242  ;;  %v712_v27 = vadd.f32 %v1726_v9, %v711_v24  ;;  %v509_v21 = vadd.f32 %v508_v23, %v1569_v37 }
 0x14f   : > { %v830_v8 = vmul.f32 %v1243_v26, %v1737_v63 }
 0x150   : > { %1246 = vtanh.f32 %v712_v27  ;;  %v487_v28 = vpop.f32.mrf.mxu0 }
 0x151   : > { %v1245_v29 = vpop.eup %1244  ;;  %v488_v30 = vadd.f32 %v487_v28, %v1569_v37  ;;  %867 = vadd.xlane.f32.xlu2 %v830_v8 }
 0x152   : > { %761 = vmatmul.f32.gmra.mxu3 %v1245_v29  ;;  %v534_v27 = vpop.f32.mrf.mxu1 }
 0x153   : > { %1248 = vtanh.f32 %v488_v30 }
 0x155   : > { %v714_v10 = vpop.f32.mrf.mxu2  ;;  %1136 = vmatmul.msk.f32.gmra.mxu1 %vm301_vm0, %v1584_v46  ;;  %v1804_v26 = vpop.f32.mrf.mxu3 }
 0x156   : > { %v1247_v32 = vpop.eup %1246  ;;  %v715_v33 = vadd.f32 %v1726_v9, %v714_v10 }
 0x157   : > { %v831_v57 = vmul.f32 %v1247_v32, %v1737_v63 }
 0x158   : > { %1250 = vtanh.f32 %v715_v33 }
 0x159   : > { %v1249_v47 = vpop.eup %1248  ;;  %1252 = vtanh.f32 %v491_v31  ;;  %869 = vadd.xlane.f32.xlu0 %v831_v57  ;;  %v921_v31 = vlaneseq }
 0x15a   : > { %764 = vmatmul.f32.gmra.mxu3 %v1249_v47  ;;  %v537_v10 = vpop.f32.mrf.mxu1  ;;  %v1819_v47 = vperm.slane %v1564_v36, 1 }
 0x15b   : > { %v1815_v57 = vand.u32 127, %v921_v31 }
 0x15d   : > { %v717_v11 = vpop.f32.mrf.mxu2  ;;  %1137 = vmatmul.msk.f32.gmra.mxu1 %vm301_vm0, %v1590_v50  ;;  %v1810_v30 = vpop.f32.mrf.mxu3  ;;  %vm923_vm1 = vcmp.eq.s32.totalorder %v1815_v57, 0 }
 0x15e   : > { %v1251_v51 = vpop.eup %1250  ;;  %v718_v34 = vadd.f32 %v1726_v9, %v717_v11 }
 0x15f   : > { %v1253_v52 = vpop.eup %1252  ;;  %v832_v53 = vmul.f32 %v1251_v51, %v1737_v63 }
 0x160   : > { %1254 = vtanh.f32 %v718_v34 }
 0x161   : > { %1256 = vtanh.f32 %v494_v48  ;;  %871 = vadd.xlane.f32.xlu1 %v832_v53  ;;  %v529_v48 = vadd.f32 %v528_v15, %v1819_v47  ;;  %v538_v15 = vadd.f32 %v537_v10, %v1819_v47 }
 0x162   : > { %767 = vmatmul.f32.gmra.mxu3 %v1253_v52  ;;  %v540_v11 = vpop.f32.mrf.mxu1 }
 0x165   : > { %v720_v56 = vpop.f32.mrf.mxu2  ;;  %1138 = vmatmul.msk.f32.gmra.mxu1 %vm301_vm0, %v1596_v54  ;;  %v1823_v51 = vpop.f32.mrf.mxu3 }
 0x166   : > { %v1255_v58 = vpop.eup %1254  ;;  %v721_v35 = vadd.f32 %v1726_v9, %v720_v56 }
 0x167   : > { %v1257_v60 = vpop.eup %1256  ;;  %v833_v61 = vmul.f32 %v1255_v58, %v1737_v63  ;;  %v532_v58 = vadd.f32 %v531_v20, %v1819_v47 }
 0x168   : > { %1258 = vtanh.f32 %v721_v35 }
 0x169   : > { %1260 = vtanh.f32 %v497_v12  ;;  %873 = vadd.xlane.f32.xlu2 %v833_v61 }
 0x16a   : > { %770 = vmatmul.f32.gmra.mxu3 %v1257_v60  ;;  %v543_v12 = vpop.f32.mrf.mxu1 }
 0x16d   : > { %v723_v0 = vpop.f32.mrf.mxu2  ;;  %1139 = vmatmul.msk.f32.gmra.mxu1 %vm301_vm0, %v1607_v59 }
 0x16e   : > { %v1259_v13 = vpop.eup %1258  ;;  %v724_v39 = vadd.f32 %v1726_v9, %v723_v0 }
 0x16f   : > { %v1261_v3 = vpop.eup %1260  ;;  %v834_v40 = vmul.f32 %v1259_v13, %v1737_v63 }
 0x170   : > { %1262 = vtanh.f32 %v724_v39 }
 0x171   : > { %1264 = vtanh.f32 %v500_v2  ;;  %875 = vadd.xlane.f32.xlu0 %v834_v40 }
 0x172   : > { %773 = vmatmul.f32.gmra.mxu3 %v1261_v3  ;;  %v546_v39 = vpop.f32.mrf.mxu1  ;;  %v535_v3 = vadd.f32 %v534_v27, %v1819_v47 }
 0x175   : > { %v726_v43 = vpop.f32.mrf.mxu2  ;;  %1140 = vmatmul.msk.f32.gmra.mxu1 %vm301_vm0, %v1621_v1 }
 0x176   : > { %v1263_v4 = vpop.eup %1262  ;;  %v727_v42 = vadd.f32 %v1726_v9, %v726_v43 }
 0x177   : > { %v1265_v18 = vpop.eup %1264  ;;  %v835_v14 = vmul.f32 %v1263_v4, %v1737_v63 }
 0x178   : > { %1266 = vtanh.f32 %v727_v42 }
 0x179   : > { %1268 = vtanh.f32 %v503_v44  ;;  %877 = vadd.xlane.f32.xlu1 %v835_v14 }
 0x17a   : > { %776 = vmatmul.f32.gmra.mxu3 %v1265_v18  ;;  %v549_v14 = vpop.f32.mrf.mxu1 }
 0x17d   : > { %v729_v5 = vpop.f32.mrf.mxu2  ;;  %1141 = vmatmul.msk.f32.gmra.mxu1 %vm301_vm0, %v1632_v41  ;;  %v1843_v41 = vpop.f32.mrf.mxu3 }
 0x17e   : > { %v1267_v17 = vpop.eup %1266  ;;  %v730_v46 = vadd.f32 %v1726_v9, %v729_v5 }
 0x17f   : > { %v1269_v6 = vpop.eup %1268  ;;  %v836_v19 = vmul.f32 %v1267_v17, %v1737_v63 }
 0x180   : > { %1270 = vtanh.f32 %v730_v46 }
 0x181   : > { %1272 = vtanh.f32 %v506_v16  ;;  %879 = vadd.xlane.f32.xlu2 %v836_v19 }
 0x182   : > { %779 = vmatmul.f32.gmra.mxu3 %v1269_v6 }
 0x185   : > { %v732_v7 = vpop.f32.mrf.mxu2  ;;  %1142 = vmatmul.msk.f32.gmra.mxu1 %vm301_vm0, %v1646_v49  ;;  %v1856_v18 = vpop.f32.mrf.mxu3 }
 0x186   : > { %v1271_v22 = vpop.eup %1270  ;;  %v733_v50 = vadd.f32 %v1726_v9, %v732_v7  ;;  %v552_v7 = vpop.f32.mrf.mxu1 }
 0x187   : > { %v1273_v24 = vpop.eup %1272  ;;  %v837_v25 = vmul.f32 %v1271_v22, %v1737_v63 }
 0x188   : > { %1274 = vtanh.f32 %v733_v50 }
 0x189   : > { %1276 = vtanh.f32 %v509_v21  ;;  %881 = vadd.xlane.f32.xlu0 %v837_v25  ;;  %v541_v21 = vadd.f32 %v540_v11, %v1819_v47 }
 0x18a   : > { %782 = vmatmul.f32.gmra.mxu3 %v1273_v24 }
 0x18d   : > { %v735_v8 = vpop.f32.mrf.mxu2  ;;  %v1867_v20 = vpop.f32.mrf.mxu3 }
 0x18e   : > { %v1275_v37 = vpop.eup %1274  ;;  %v736_v54 = vadd.f32 %v1726_v9, %v735_v8 }
 0x18f   : > { %v1277_v28 = vpop.eup %1276  ;;  %v838_v29 = vmul.f32 %v1275_v37, %v1737_v63 }
 0x190   : > { %1278 = vtanh.f32 %v736_v54  ;;  %v555_v54 = vpop.f32.mrf.mxu1 }
 0x191   : > { %883 = vadd.xlane.f32.xlu1 %v838_v29 }
 0x192   : > { %785 = vmatmul.f32.gmra.mxu3 %v1277_v28  ;;  %v544_v28 = vadd.f32 %v543_v12, %v1819_v47 }
 0x195   : > { %v738_v32 = vpop.f32.mrf.mxu2  ;;  %v1877_v29 = vpop.f32.mrf.mxu3 }
 0x196   : > { %v1279_v33 = vpop.eup %1278  ;;  %v739_v59 = vadd.f32 %v1726_v9, %v738_v32 }
 0x197   : > { %v839_v38 = vmul.f32 %v1279_v33, %v1737_v63 }
 0x198   : > { %1280 = vtanh.f32 %v739_v59 }
 0x199   : > { %885 = vadd.xlane.f32.xlu2 %v839_v38 }
 0x19c   : > { %v858_v1 = vpop.xlane.xlu0 %857 }
 0x19d   : > { %v924_v36 = vsel %vm923_vm1, %v858_v1, 0.0  ;;  %v741_v34 = vpop.f32.mrf.mxu2  ;;  %v558_v1 = vpop.f32.mrf.mxu1 }
 0x19e   : > { %v1281_v52 = vpop.eup %1280  ;;  %v956_v53 = vadd.f32 %v924_v36, %v529_v48  ;;  %v742_v55 = vadd.f32 %v1726_v9, %v741_v34  ;;  %v547_v48 = vadd.f32 %v546_v39, %v1819_v47 }
 0x19f   : > { %v840_v56 = vmul.f32 %v1281_v52, %v1737_v63 }
 0x1a0   : > { %989 = vst.msk [vmem:[%s1830_s19] sm:$0xff] %vm988_vm2, %v956_v53  ;;  %1282 = vtanh.f32 %v742_v55 }
 0x1a1   : > { %887 = vadd.xlane.f32.xlu0 %v840_v56 }
 0x1a4   : > { %v860_v35 = vpop.xlane.xlu0 %859 }
 0x1a5   : > { %v925_v60 = vsel %vm923_vm1, %v860_v35, 0.0  ;;  %v744_v61 = vpop.f32.mrf.mxu2 }
 0x1a6   : > { %v1283_v62 = vpop.eup %1282  ;;  %v957_v0 = vadd.f32 %v925_v60, %v532_v58  ;;  %v745_v2 = vadd.f32 %v1726_v9, %v744_v61  ;;  %v550_v58 = vadd.f32 %v549_v14, %v1819_v47 }
 0x1a7   : > { %v841_v13 = vmul.f32 %v1283_v62, %v1737_v63  ;;  %v561_v62 = vpop.f32.mrf.mxu1 }
 0x1a8   : > { %990 = vst.msk [vmem:[%s1830_s19 + $0x8] sm:$0xff] %vm988_vm2, %v957_v0  ;;  %1284 = vtanh.f32 %v745_v2 }
 0x1a9   : > { %889 = vadd.xlane.f32.xlu1 %v841_v13 }
 0x1ac   : > { %v862_v40 = vpop.xlane.xlu1 %861 }
 0x1ad   : > { %v926_v43 = vsel %vm923_vm1, %v862_v40, 0.0  ;;  %v747_v44 = vpop.f32.mrf.mxu2 }
 0x1ae   : > { %v1285_v49 = vpop.eup %1284  ;;  %v958_v45 = vadd.f32 %v926_v43, %v535_v3  ;;  %v748_v4 = vadd.f32 %v1726_v9, %v747_v44  ;;  %v553_v3 = vadd.f32 %v552_v7, %v1819_v47 }
 0x1af   : > { %v842_v42 = vmul.f32 %v1285_v49, %v1737_v63  ;;  %v564_v14 = vpop.f32.mrf.mxu1 }
 0x1b0   : > { %991 = vst.msk [vmem:[%s1830_s19 + $0x10] sm:$0xff] %vm988_vm2, %v958_v45  ;;  %1286 = vtanh.f32 %v748_v4 }
 0x1b1   : > { %891 = vadd.xlane.f32.xlu2 %v842_v42 }
 0x1b4   : > { %v864_v5 = vpop.xlane.xlu1 %863 }
 0x1b5   : > { %v927_v16 = vsel %vm923_vm1, %v864_v5, 0.0  ;;  %v750_v17 = vpop.f32.mrf.mxu2 }
 0x1b6   : > { %v1287_v46 = vpop.eup %1286  ;;  %v959_v6 = vadd.f32 %v927_v16, %v538_v15  ;;  %v751_v19 = vadd.f32 %v1726_v9, %v750_v17  ;;  %v556_v15 = vadd.f32 %v555_v54, %v1819_v47  ;;  %v562_v54 = vadd.f32 %v561_v62, %v1819_v47 }
 0x1b7   : > { %v843_v23 = vmul.f32 %v1287_v46, %v1737_v63  ;;  %v567_v7 = vpop.f32.mrf.mxu1 }
 0x1b8   : > { %992 = vst.msk [vmem:[%s1830_s19 + $0x18] sm:$0xff] %vm988_vm2, %v959_v6  ;;  %1288 = vtanh.f32 %v751_v19 }
 0x1b9   : > { %893 = vadd.xlane.f32.xlu0 %v843_v23 }
 0x1bc   : > { %v866_v22 = vpop.xlane.xlu2 %865 }
 0x1bd   : > { %v928_v50 = vsel %vm923_vm1, %v866_v22, 0.0  ;;  %v753_v24 = vpop.f32.mrf.mxu2 }
 0x1be   : > { %v1289_v25 = vpop.eup %1288  ;;  %v960_v27 = vadd.f32 %v928_v50, %v541_v21  ;;  %v754_v8 = vadd.f32 %v1726_v9, %v753_v24  ;;  %v559_v21 = vadd.f32 %v558_v1, %v1819_v47 }
 0x1bf   : > { %v844_v37 = vmul.f32 %v1289_v25, %v1737_v63 }
 0x1c0   : > { %993 = vst.msk [vmem:[%s1830_s19 + $0x20] sm:$0xff] %vm988_vm2, %v960_v27  ;;  %1290 = vtanh.f32 %v754_v8 }
 0x1c1   : > { %895 = vadd.xlane.f32.xlu1 %v844_v37 }
 0x1c4   : > { %v868_v10 = vpop.xlane.xlu2 %867 }
 0x1c5   : > { %v929_v31 = vsel %vm923_vm1, %v868_v10, 0.0  ;;  %v756_v32 = vpop.f32.mrf.mxu2 }
 0x1c6   : > { %v1291_v33 = vpop.eup %1290  ;;  %v961_v59 = vadd.f32 %v929_v31, %v544_v28  ;;  %v757_v38 = vadd.f32 %v1726_v9, %v756_v32  ;;  %v570_v28 = vpop.f32.mrf.mxu1 }
 0x1c7   : > { %v845_v11 = vmul.f32 %v1291_v33, %v1737_v63 }
 0x1c8   : > { %994 = vst.msk [vmem:[%s1830_s19 + $0x28] sm:$0xff] %vm988_vm2, %v961_v59  ;;  %1292 = vtanh.f32 %v757_v38 }
 0x1c9   : > { %897 = vadd.xlane.f32.xlu2 %v845_v11 }
 0x1cc   : > { %v870_v36 = vpop.xlane.xlu0 %869 }
 0x1cd   : > { %v930_v34 = vsel %vm923_vm1, %v870_v36, 0.0  ;;  %v759_v52 = vpop.f32.mrf.mxu3 }
 0x1ce   : > { %v1293_v53 = vpop.eup %1292  ;;  %v962_v55 = vadd.f32 %v930_v34, %v547_v48  ;;  %v760_v56 = vadd.f32 %v1726_v9, %v759_v52  ;;  %v565_v48 = vadd.f32 %v564_v14, %v1819_v47  ;;  %v573_v52 = vpop.f32.mrf.mxu1 }
 0x1cf   : > { %v846_v12 = vmul.f32 %v1293_v53, %v1737_v63 }
 0x1d0   : > { %995 = vst.msk [vmem:[%s1830_s19 + $0x30] sm:$0xff] %vm988_vm2, %v962_v55  ;;  %1294 = vtanh.f32 %v760_v56 }
 0x1d1   : > { %899 = vadd.xlane.f32.xlu0 %v846_v12 }
 0x1d4   : > { %v872_v35 = vpop.xlane.xlu1 %871 }
 0x1d5   : > { %v931_v60 = vsel %vm923_vm1, %v872_v35, 0.0  ;;  %v762_v61 = vpop.f32.mrf.mxu3 }
 0x1d6   : > { %v1295_v0 = vpop.eup %1294  ;;  %v963_v2 = vadd.f32 %v931_v60, %v550_v58  ;;  %v763_v13 = vadd.f32 %v1726_v9, %v762_v61  ;;  %v568_v58 = vadd.f32 %v567_v7, %v1819_v47 }
 0x1d7   : > { %v847_v39 = vmul.f32 %v1295_v0, %v1737_v63 }
 0x1d8   : > { %996 = vst.msk [vmem:[%s1830_s19 + $0x38] sm:$0xff] %vm988_vm2, %v963_v2  ;;  %1296 = vtanh.f32 %v763_v13 }
 0x1d9   : > { %901 = vadd.xlane.f32.xlu1 %v847_v39  ;;  %v576_v39 = vpop.f32.mrf.mxu1 }
 0x1da   : > { %v577_v7 = vadd.f32 %v576_v39, %v1819_v47 }
 0x1dc   : > { %v874_v40 = vpop.xlane.xlu2 %873 }
 0x1dd   : > { %v932_v43 = vsel %vm923_vm1, %v874_v40, 0.0  ;;  %v765_v44 = vpop.f32.mrf.mxu3 }
 0x1de   : > { %v1297_v49 = vpop.eup %1296  ;;  %v964_v45 = vadd.f32 %v932_v43, %v553_v3  ;;  %v766_v4 = vadd.f32 %v1726_v9, %v765_v44  ;;  %v571_v3 = vadd.f32 %v570_v28, %v1819_v47 }
 0x1df   : > { %v848_v42 = vmul.f32 %v1297_v49, %v1737_v63 }
 0x1e0   : > { %997 = vst.msk [vmem:[%s1830_s19 + $0x40] sm:$0xff] %vm988_vm2, %v964_v45  ;;  %1298 = vtanh.f32 %v766_v4 }
 0x1e1   : > { %903 = vadd.xlane.f32.xlu2 %v848_v42  ;;  %v579_v14 = vpop.f32.mrf.mxu1 }
 0x1e4   : > { %v876_v5 = vpop.xlane.xlu0 %875 }
 0x1e5   : > { %v933_v16 = vsel %vm923_vm1, %v876_v5, 0.0  ;;  %v768_v17 = vpop.f32.mrf.mxu3 }
 0x1e6   : > { %v1299_v46 = vpop.eup %1298  ;;  %v965_v6 = vadd.f32 %v933_v16, %v556_v15  ;;  %v769_v19 = vadd.f32 %v1726_v9, %v768_v17  ;;  %v574_v15 = vadd.f32 %v573_v52, %v1819_v47 }
 0x1e7   : > { %v849_v23 = vmul.f32 %v1299_v46, %v1737_v63 }
 0x1e8   : > { %998 = vst.msk [vmem:[%s1830_s19 + $0x48] sm:$0xff] %vm988_vm2, %v965_v6  ;;  %1300 = vtanh.f32 %v769_v19 }
 0x1e9   : > { %905 = vadd.xlane.f32.xlu0 %v849_v23 }
 0x1ec   : > { %v878_v22 = vpop.xlane.xlu1 %877 }
 0x1ed   : > { %v934_v50 = vsel %vm923_vm1, %v878_v22, 0.0  ;;  %v771_v24 = vpop.f32.mrf.mxu3 }
 0x1ee   : > { %v1301_v25 = vpop.eup %1300  ;;  %v966_v27 = vadd.f32 %v934_v50, %v559_v21  ;;  %v772_v8 = vadd.f32 %v1726_v9, %v771_v24  ;;  %v582_v21 = vpop.f32.mrf.mxu1 }
 0x1ef   : > { %v850_v37 = vmul.f32 %v1301_v25, %v1737_v63 }
 0x1f0   : > { %999 = vst.msk [vmem:[%s1830_s19 + $0x50] sm:$0xff] %vm988_vm2, %v966_v27  ;;  %1302 = vtanh.f32 %v772_v8 }
 0x1f1   : > { %907 = vadd.xlane.f32.xlu1 %v850_v37 }
 0x1f4   : > { %v880_v10 = vpop.xlane.xlu2 %879 }
 0x1f5   : > { %v935_v31 = vsel %vm923_vm1, %v880_v10, 0.0  ;;  %v774_v32 = vpop.f32.mrf.mxu3  ;;  %v583_v10 = vadd.f32 %v582_v21, %v1819_v47 }
 0x1f6   : > { %v1303_v33 = vpop.eup %1302  ;;  %v967_v59 = vadd.f32 %v935_v31, %v562_v54  ;;  %v775_v38 = vadd.f32 %v1726_v9, %v774_v32  ;;  %v585_v54 = vpop.f32.mrf.mxu1 }
 0x1f7   : > { %v851_v11 = vmul.f32 %v1303_v33, %v1737_v63 }
 0x1f8   : > { %1000 = vst.msk [vmem:[%s1830_s19 + $0x58] sm:$0xff] %vm988_vm2, %v967_v59  ;;  %1304 = vtanh.f32 %v775_v38  ;;  %v586_v59 = vadd.f32 %v585_v54, %v1819_v47 }
 0x1f9   : > { %909 = vadd.xlane.f32.xlu2 %v851_v11 }
 0x1fc   : > { %v882_v1 = vpop.xlane.xlu0 %881 }
 0x1fd   : > { %v936_v36 = vsel %vm923_vm1, %v882_v1, 0.0  ;;  %v777_v34 = vpop.f32.mrf.mxu3 }
 0x1fe   : > { %v1305_v53 = vpop.eup %1304  ;;  %v968_v55 = vadd.f32 %v936_v36, %v565_v48  ;;  %v778_v56 = vadd.f32 %v1726_v9, %v777_v34  ;;  %v588_v33 = vpop.f32.mrf.mxu1 }
 0x1ff   : > { %v852_v12 = vmul.f32 %v1305_v53, %v1737_v63  ;;  %v589_v36 = vadd.f32 %v588_v33, %v1819_v47 }
 0x200   : > { %1001 = vst.msk [vmem:[%s1830_s19 + $0x60] sm:$0xff] %vm988_vm2, %v968_v55  ;;  %1306 = vtanh.f32 %v778_v56 }
 0x201   : > { %911 = vadd.xlane.f32.xlu0 %v852_v12 }
 0x204   : > { %v884_v35 = vpop.xlane.xlu1 %883 }
 0x205   : > { %v937_v60 = vsel %vm923_vm1, %v884_v35, 0.0  ;;  %v780_v61 = vpop.f32.mrf.mxu3 }
 0x206   : > { %v1307_v62 = vpop.eup %1306  ;;  %v969_v0 = vadd.f32 %v937_v60, %v568_v58  ;;  %v781_v2 = vadd.f32 %v1726_v9, %v780_v61  ;;  %v591_v1 = vpop.f32.mrf.mxu1 }
 0x207   : > { %v853_v13 = vmul.f32 %v1307_v62, %v1737_v63  ;;  %v592_v55 = vadd.f32 %v591_v1, %v1819_v47 }
 0x208   : > { %1002 = vst.msk [vmem:[%s1830_s19 + $0x68] sm:$0xff] %vm988_vm2, %v969_v0  ;;  %1308 = vtanh.f32 %v781_v2 }
 0x209   : > { %913 = vadd.xlane.f32.xlu1 %v853_v13 }
 0x20c   : > { %v886_v40 = vpop.xlane.xlu2 %885 }
 0x20d   : > { %v938_v43 = vsel %vm923_vm1, %v886_v40, 0.0  ;;  %v783_v44 = vpop.f32.mrf.mxu3 }
 0x20e   : > { %v1309_v49 = vpop.eup %1308  ;;  %v970_v45 = vadd.f32 %v938_v43, %v571_v3  ;;  %v784_v4 = vadd.f32 %v1726_v9, %v783_v44  ;;  %v594_v56 = vpop.f32.mrf.mxu1 }
 0x20f   : > { %v854_v42 = vmul.f32 %v1309_v49, %v1737_v63  ;;  %v595_v60 = vadd.f32 %v594_v56, %v1819_v47 }
 0x210   : > { %1003 = vst.msk [vmem:[%s1830_s19 + $0x70] sm:$0xff] %vm988_vm2, %v970_v45  ;;  %1310 = vtanh.f32 %v784_v4 }
 0x211   : > { %915 = vadd.xlane.f32.xlu2 %v854_v42  ;;  %v604_v42 = vadd.f32 %v1804_v26, %v1819_v47  ;;  %v610_v26 = vadd.f32 %v1823_v51, %v1819_v47  ;;  %v616_v51 = vadd.f32 %v1856_v18, %v1819_v47  ;;  %v622_v18 = vadd.f32 %v1877_v29, %v1819_v47 }
 0x214   : > { %v888_v5 = vpop.xlane.xlu0 %887 }
 0x215   : > { %v939_v16 = vsel %vm923_vm1, %v888_v5, 0.0  ;;  %v786_v17 = vpop.f32.mrf.mxu3 }
 0x216   : > { %v1311_v46 = vpop.eup %1310  ;;  %v971_v6 = vadd.f32 %v939_v16, %v574_v15  ;;  %v787_v19 = vadd.f32 %v1726_v9, %v786_v17  ;;  %v580_v9 = vadd.f32 %v579_v14, %v1819_v47  ;;  %v597_v0 = vpop.f32.mrf.mxu1  ;;  %v607_v16 = vadd.f32 %v1810_v30, %v1819_v47 }
 0x217   : > { %v855_v23 = vmul.f32 %v1311_v46, %v1737_v63  ;;  %v598_v13 = vadd.f32 %v597_v0, %v1819_v47  ;;  %v613_v30 = vadd.f32 %v1843_v41, %v1819_v47  ;;  %v619_v41 = vadd.f32 %v1867_v20, %v1819_v47 }
 0x218   : > { %1004 = vst.msk [vmem:[%s1830_s19 + $0x78] sm:$0xff] %vm988_vm2, %v971_v6  ;;  %1312 = vtanh.f32 %v787_v19 }
 0x219   : > { %917 = vadd.xlane.f32.xlu0 %v855_v23 }
 0x21c   : > { %v890_v22 = vpop.xlane.xlu1 %889 }
 0x21d   : > { %v940_v50 = vsel %vm923_vm1, %v890_v22, 0.0 }
 0x21e   : > { %v1313_v24 = vpop.eup %1312  ;;  %v972_v25 = vadd.f32 %v940_v50, %v577_v7  ;;  %v600_v43 = vpop.f32.mrf.mxu1 }
 0x21f   : > { %v856_v27 = vmul.f32 %v1313_v24, %v1737_v63  ;;  %v601_v44 = vadd.f32 %v600_v43, %v1819_v47 }
 0x220   : > { %1005 = vst.msk [vmem:[%s1830_s19 + $0x80] sm:$0xff] %vm988_vm2, %v972_v25 }
 0x221   : > { %919 = vadd.xlane.f32.xlu1 %v856_v27 }
 0x224   : > { %v892_v8 = vpop.xlane.xlu2 %891 }
 0x225   : > { %v941_v37 = vsel %vm923_vm1, %v892_v8, 0.0 }
 0x226   : > { %v973_v28 = vadd.f32 %v941_v37, %v580_v9 }
 0x228   : > { %1006 = vst.msk [vmem:[%s1830_s19 + $0x88] sm:$0xff] %vm988_vm2, %v973_v28 }
 0x22c   : > { %v894_v31 = vpop.xlane.xlu0 %893 }
 0x22d   : > { %v942_v63 = vsel %vm923_vm1, %v894_v31, 0.0 }
 0x22e   : > { %v974_v32 = vadd.f32 %v942_v63, %v583_v10 }
 0x230   : > { %1007 = vst.msk [vmem:[%s1830_s19 + $0x90] sm:$0xff] %vm988_vm2, %v974_v32 }
 0x234   : > { %v896_v38 = vpop.xlane.xlu1 %895 }
 0x235   : > { %v943_v11 = vsel %vm923_vm1, %v896_v38, 0.0 }
 0x236   : > { %v975_v48 = vadd.f32 %v943_v11, %v586_v59 }
 0x238   : > { %1008 = vst.msk [vmem:[%s1830_s19 + $0x98] sm:$0xff] %vm988_vm2, %v975_v48 }
 0x23c   : > { %v898_v34 = vpop.xlane.xlu2 %897 }
 0x23d   : > { %v944_v52 = vsel %vm923_vm1, %v898_v34, 0.0 }
 0x23e   : > { %v976_v53 = vadd.f32 %v944_v52, %v589_v36 }
 0x240   : > { %1009 = vst.msk [vmem:[%s1830_s19 + $0xa0] sm:$0xff] %vm988_vm2, %v976_v53 }
 0x244   : > { %v900_v12 = vpop.xlane.xlu0 %899 }
 0x245   : > { %v945_v58 = vsel %vm923_vm1, %v900_v12, 0.0 }
 0x246   : > { %v977_v35 = vadd.f32 %v945_v58, %v592_v55 }
 0x248   : > { %1010 = vst.msk [vmem:[%s1830_s19 + $0xa8] sm:$0xff] %vm988_vm2, %v977_v35 }
 0x24c   : > { %v902_v61 = vpop.xlane.xlu1 %901 }
 0x24d   : > { %v946_v62 = vsel %vm923_vm1, %v902_v61, 0.0 }
 0x24e   : > { %v978_v2 = vadd.f32 %v946_v62, %v595_v60 }
 0x250   : > { %1011 = vst.msk [vmem:[%s1830_s19 + $0xb0] sm:$0xff] %vm988_vm2, %v978_v2 }
 0x254   : > { %v904_v39 = vpop.xlane.xlu2 %903 }
 0x255   : > { %v947_v3 = vsel %vm923_vm1, %v904_v39, 0.0 }
 0x256   : > { %v979_v40 = vadd.f32 %v947_v3, %v598_v13 }
 0x258   : > { %1012 = vst.msk [vmem:[%s1830_s19 + $0xb8] sm:$0xff] %vm988_vm2, %v979_v40 }
 0x25c   : > { %v906_v49 = vpop.xlane.xlu0 %905 }
 0x25d   : > { %v948_v45 = vsel %vm923_vm1, %v906_v49, 0.0 }
 0x25e   : > { %v980_v4 = vadd.f32 %v948_v45, %v601_v44 }
 0x260   : > { %1013 = vst.msk [vmem:[%s1830_s19 + $0xc0] sm:$0xff] %vm988_vm2, %v980_v4 }
 0x264   : > { %v908_v14 = vpop.xlane.xlu1 %907 }
 0x265   : > { %v949_v15 = vsel %vm923_vm1, %v908_v14, 0.0 }
 0x266   : > { %v981_v5 = vadd.f32 %v949_v15, %v604_v42 }
 0x268   : > { %1014 = vst.msk [vmem:[%s1830_s19 + $0xc8] sm:$0xff] %vm988_vm2, %v981_v5 }
 0x26c   : > { %v910_v17 = vpop.xlane.xlu2 %909 }
 0x26d   : > { %v950_v46 = vsel %vm923_vm1, %v910_v17, 0.0 }
 0x26e   : > { %v982_v6 = vadd.f32 %v950_v46, %v607_v16 }
 0x270   : > { %1015 = vst.msk [vmem:[%s1830_s19 + $0xd0] sm:$0xff] %vm988_vm2, %v982_v6 }
 0x274   : > { %v912_v19 = vpop.xlane.xlu0 %911 }
 0x275   : > { %v951_v23 = vsel %vm923_vm1, %v912_v19, 0.0 }
 0x276   : > { %v983_v7 = vadd.f32 %v951_v23, %v610_v26 }
 0x278   : > { %1016 = vst.msk [vmem:[%s1830_s19 + $0xd8] sm:$0xff] %vm988_vm2, %v983_v7 }
 0x27c   : > { %v914_v21 = vpop.xlane.xlu1 %913 }
 0x27d   : > { %v952_v22 = vsel %vm923_vm1, %v914_v21, 0.0 }
 0x27e   : > { %v984_v50 = vadd.f32 %v952_v22, %v613_v30 }
 0x280   : > { %1017 = vst.msk [vmem:[%s1830_s19 + $0xe0] sm:$0xff] %vm988_vm2, %v984_v50 }
 0x284   : > { %v916_v24 = vpop.xlane.xlu2 %915 }
 0x285   : > { %v953_v25 = vsel %vm923_vm1, %v916_v24, 0.0 }
 0x286   : > { %v985_v27 = vadd.f32 %v953_v25, %v616_v51 }
 0x288   : > { %1018 = vst.msk [vmem:[%s1830_s19 + $0xe8] sm:$0xff] %vm988_vm2, %v985_v27 }
 0x28c   : > { %v918_v9 = vpop.xlane.xlu0 %917 }
 0x28d   : > { %v954_v8 = vsel %vm923_vm1, %v918_v9, 0.0 }
 0x28e   : > { %v986_v37 = vadd.f32 %v954_v8, %v619_v41 }
 0x290   : > { %1019 = vst.msk [vmem:[%s1830_s19 + $0xf0] sm:$0xff] %vm988_vm2, %v986_v37 }
 0x294   : > { %v920_v54 = vpop.xlane.xlu1 %919 }
 0x295   : > { %v955_v28 = vsel %vm923_vm1, %v920_v54, 0.0 }
 0x296   : > { %v987_v10 = vadd.f32 %v955_v28, %v622_v18 }
 0x298   : > { %1020 = vst.msk [vmem:[%s1830_s19 + $0xf8] sm:$0xff] %vm988_vm2, %v987_v10 }
 0x299 PF: > { %s16_s21 = sadd.s32 1, %s1320_s21  }
 0x29a   : > { %p13_p4 = scmp.ge.s32.totalorder %s16_s21, 4  }
 0x29c   :  { %15 = sbr.rel (!%p13_p4) target bundleno = 1 (0x1), region = 74 }

</bundles_post_ra>
